<compile_context>
chip_gen: v7x
topology: tpu7x:2x2x1
jax: 0.10.0
libtpu: 0.0.40
codegen_flags: <defaults>
</compile_context>

<pallas_src>
import jax
import jax.numpy as jnp
from jax.experimental import pallas as pl
from jax.experimental.pallas import tpu as pltpu

# TODO(synk): arbitrary user-supplied embedder sub-modules cannot be translated
# generically; this implements the canonical Linear(1, D_i) ensemble, which
# collapses exactly to the fused FMA below.


def _ensemble_embedding_kernel(nums_ref, wb_ref, out_ref):
    # nums_ref: (tile_b, tile_s, 1)       f32 -- one scalar per output row
    # wb_ref:   (2, tile_d)               f32 -- row 0 = concat'd weights, row 1 = biases
    # out_ref:  (tile_b, tile_s, tile_d)  out_dtype
    nums = nums_ref[...]                       # (tb, ts, 1)  -- sublane scalars
    w = wb_ref[0:1, :][None, :, :]             # (1, 1, td)   -- lane vector
    b = wb_ref[1:2, :][None, :, :]             # (1, 1, td)
    # f32 compute; cast only at the store (bf16 output halves HBM writes).
    out_ref[...] = (nums * w + b).astype(out_ref.dtype)


def ensemble_embedding(
    numbers,
    w_cat,
    b_cat,
    *,
    out_dtype=jnp.float32,               # pass jnp.bfloat16 when the consumer accepts it (~2x fewer writes)
    target_block_bytes=4 * 1024 * 1024,  # ~4 MiB output blocks: good on v5e/v6e/v7x with the vmem limit below
    max_tile_d=2048,                     # D is tiled (multiples of 128) only above this
    max_rows_per_block=4096,             # caps the (rows, 1) numbers VMEM block (512 B/row lane-padded)
):
    """numbers: [..., S] float; w_cat/b_cat: [D_total] float32.

    Returns [..., S, D_total] = concat_i(numbers[..., None] @ W_i.T + b_i).
    """
    assert numbers.ndim >= 1, "numbers must have at least one dimension"
    *lead, S = numbers.shape
    B = 1
    for d_ in lead:
        B *= int(d_)
    D = int(w_cat.shape[0])
    N = B * S

    out_itemsize = jnp.dtype(out_dtype).itemsize
    # Keep the second-minor (row) tile aligned to the packed-store granularity.
    row_align = 8 if out_itemsize >= 4 else (16 if out_itemsize == 2 else 32)

    # ---- D tiling: full-extent block (legal for any D) unless D is huge ----
    if D <= max_tile_d:
        tile_d = D
    else:
        tile_d = max_tile_d                       # multiple of 128
    grid_d = pl.cdiv(D, tile_d)

    # ---- row tiling over (B, S): ~target_block_bytes per output block ----
    rows_target = target_block_bytes // (tile_d * out_itemsize)
    rows_target = max(row_align, (rows_target // row_align) * row_align)
    rows_target = min(rows_target, max_rows_per_block)

    if S <= rows_target:
        tile_s = S                                # full extent: legal regardless of alignment
        tile_b = max(1, min(B, rows_target // max(S, 1)))
    else:
        tile_b = 1
        tile_s = rows_target                      # multiple of row_align (>= 8)
    grid_b = pl.cdiv(B, tile_b)
    grid_s = pl.cdiv(S, tile_s)

    # ---- operands (no output padding anywhere; ragged tiles -> boundary blocks) ----
    # numbers as (B, S, 1): the trailing 1 is lane-padded in HBM, but this array
    # is tiny next to the N x D output; it streams per tile (a few KiB / step).
    nums3 = numbers.reshape(B, S).astype(jnp.float32)[..., None]
    # Weights + biases fused into one small resident (2, D) input.
    wb = jnp.stack([w_cat.astype(jnp.float32), b_cat.astype(jnp.float32)], axis=0)

    cost = pl.CostEstimate(
        flops=2 * N * D,
        transcendentals=0,
        bytes_accessed=N * D * out_itemsize + 4 * N + 2 * 4 * D,
    )

    out = pl.pallas_call(
        _ensemble_embedding_kernel,
        out_shape=jax.ShapeDtypeStruct((B, S, D), out_dtype),
        grid_spec=pltpu.PrefetchScalarGridSpec(
            num_scalar_prefetch=0,
            grid=(grid_b, grid_s, grid_d),
            in_specs=[
                pl.BlockSpec((tile_b, tile_s, 1), lambda ib, is_, id_: (ib, is_, 0)),
                pl.BlockSpec((2, tile_d), lambda ib, is_, id_: (0, id_)),
            ],
            out_specs=pl.BlockSpec(
                (tile_b, tile_s, tile_d), lambda ib, is_, id_: (ib, is_, id_)
            ),
        ),
        compiler_params=pltpu.CompilerParams(
            dimension_semantics=("parallel", "parallel", "parallel"),
            vmem_limit_bytes=48 * 1024 * 1024,
        ),
        cost_estimate=cost,
    )(nums3, wb)

    # Splitting only the leading (non-tiled) dim back out is layout-preserving.
    return out.reshape(*lead, S, D)


def make_ensemble_params(key, embed_dims):
    """Deterministically build per-embedder Linear(1, D_i) params and concat them."""
    ws, bs = [], []
    for i, d in enumerate(embed_dims):
        kw, kb = jax.random.split(jax.random.fold_in(key, i))
        # nn.Linear(1, d): weight [d, 1], bias [d]; bound = 1/sqrt(in_features) = 1
        ws.append(jax.random.uniform(kw, (d,), jnp.float32, -1.0, 1.0))
        bs.append(jax.random.uniform(kb, (d,), jnp.float32, -1.0, 1.0))
    return jnp.concatenate(ws, axis=0), jnp.concatenate(bs, axis=0)


if __name__ == "__main__":
    key = jax.random.PRNGKey(0)
    k_nums, k_params = jax.random.split(key)

    # Small shapes: batch=2, seq=8; three embedders with dims 32, 64, 32 -> 128 total.
    B, S = 2, 8
    embed_dims = (32, 64, 32)
    D_total = sum(embed_dims)

    numbers = jax.random.normal(k_nums, (B, S), jnp.float32)
    w_cat, b_cat = make_ensemble_params(k_params, embed_dims)

    # Pure-JAX reference (per-embedder Linear(1, D_i) + concat collapses to this).
    ref = numbers[..., None] * w_cat[None, None, :] + b_cat[None, None, :]

    # f32 output: exact module semantics.
    out = jax.block_until_ready(ensemble_embedding(numbers, w_cat, b_cat))
    assert out.shape == (B, S, D_total)
    assert jnp.allclose(out, ref, atol=1e-6), "f32 mismatch vs reference"

    # bf16 output: same fused FMA in f32, cast at the store (halves HBM writes).
    out_bf16 = jax.block_until_ready(
        ensemble_embedding(numbers, w_cat, b_cat, out_dtype=jnp.bfloat16)
    )
    assert out_bf16.shape == (B, S, D_total)
    assert jnp.allclose(out_bf16.astype(jnp.float32), ref, atol=3e-2, rtol=3e-2), (
        "bf16 mismatch vs reference"
    )

    print("KERNEL_OK")
</pallas_src>

<mosaic_0001>
module attributes {stable_mosaic.version = 11 : i64} {
  func.func @_ensemble_embedding_kernel(%arg0: i32, %arg1: i32, %arg2: i32, %arg3: memref<2x8x1xf32, #tpu.memory_space<vmem>>, %arg4: memref<2x128xf32, #tpu.memory_space<vmem>>, %arg5: memref<2x8x128xf32, #tpu.memory_space<vmem>>) attributes {dimension_semantics = [#tpu.dimension_semantics<parallel>, #tpu.dimension_semantics<parallel>, #tpu.dimension_semantics<parallel>], iteration_bounds = array<i64: 1, 1, 1>, scalar_prefetch = 0 : i64, scratch_operands = 0 : i64, tpu.core_type = #tpu.core_type<tc>, window_params = [{transform_indices = @transform_0, window_bounds = array<i64: 2, 8, 1>}, {transform_indices = @transform_1, window_bounds = array<i64: 2, 128>}, {transform_indices = @transform_2, window_bounds = array<i64: 2, 8, 128>}]} {
    %c0 = arith.constant 0 : index
    %c0_0 = arith.constant 0 : index
    %c0_1 = arith.constant 0 : index
    %0 = vector.load %arg3[%c0, %c0_0, %c0_1] : memref<2x8x1xf32, #tpu.memory_space<vmem>>, vector<2x8x1xf32>
    %c0_2 = arith.constant 0 : index
    %c0_3 = arith.constant 0 : index
    %1 = vector.load %arg4[%c0_2, %c0_3] : memref<2x128xf32, #tpu.memory_space<vmem>>, vector<1x128xf32>
    %2 = vector.shape_cast %1 : vector<1x128xf32> to vector<1x1x128xf32>
    %c1 = arith.constant 1 : index
    %c0_4 = arith.constant 0 : index
    %3 = vector.load %arg4[%c1, %c0_4] : memref<2x128xf32, #tpu.memory_space<vmem>>, vector<1x128xf32>
    %4 = vector.shape_cast %3 : vector<1x128xf32> to vector<1x1x128xf32>
    %5 = vector.broadcast %0 : vector<2x8x1xf32> to vector<2x8x128xf32>
    %6 = vector.broadcast %2 : vector<1x1x128xf32> to vector<2x8x128xf32>
    %7 = arith.mulf %5, %6 : vector<2x8x128xf32>
    %8 = vector.broadcast %4 : vector<1x1x128xf32> to vector<2x8x128xf32>
    %9 = arith.addf %7, %8 : vector<2x8x128xf32>
    %c0_5 = arith.constant 0 : index
    %c0_6 = arith.constant 0 : index
    %c0_7 = arith.constant 0 : index
    %10 = vector.load %arg5[%c0_5, %c0_6, %c0_7] : memref<2x8x128xf32, #tpu.memory_space<vmem>>, vector<2x8x128xf32>
    tpu.vector_store %arg5[%c0_5, %c0_6, %c0_7], %9 {strides = array<i32>} : memref<2x8x128xf32, #tpu.memory_space<vmem>>, vector<2x8x128xf32>,
    return
  }
  func.func @transform_0(%arg0: i32, %arg1: i32, %arg2: i32) -> (i32, i32, i32) {
    %c0_i32 = arith.constant 0 : i32
    %c0_i32_0 = arith.constant 0 : i32
    return %arg0, %arg1, %c0_i32 : i32, i32, i32
  }
  func.func @transform_1(%arg0: i32, %arg1: i32, %arg2: i32) -> (i32, i32) {
    %c0_i32 = arith.constant 0 : i32
    %c0_i32_0 = arith.constant 0 : i32
    return %c0_i32, %arg2 : i32, i32
  }
  func.func @transform_2(%arg0: i32, %arg1: i32, %arg2: i32) -> (i32, i32, i32) {
    %c0_i32 = arith.constant 0 : i32
    return %arg0, %arg1, %arg2 : i32, i32, i32
  }
}

</mosaic_0001>

<bundles_post_ra>
// kernel: tpu_custom_call.1
= control target key start
LH: loop header
LB: loop body
LE: loop exit
PB: predicated region body
PF: predicated region fallthrough
CT: control target
= control target key end

     0   :  { %v87_v1 = vmov 0   ;;  %s130_s0 = inlined_call_operand.vmem [shape: f32[2,8,1], index: 0, kind: input, shape index: {}]   ;;  %s131_s1 = inlined_call_operand.vmem [shape: f32[2,128], index: 1, kind: input, shape index: {}]   ;;  %s132_s2 = inlined_call_operand.hbm [shape: f32[2,8,128], index: 2, kind: output, shape index: {}]  }
   0x1   :  { %v12_v0 = vld [vmem:[%s130_s0] sm:$0xff]  ;;  %62 = vset.pattern.permute.xlu0 %v87_v1 }
   0x2   :  { %7 = vsyncpa [#allocation3], 0  ;;  %18 = vperm.xlu0 %62, %v12_v0   ;;  %v13_v2 = vld [vmem:[%s130_s0 + $0x8] sm:$0xff]  ;;  %v56_v3 = vld [vmem:[%s131_s1] ss:$0 sm:$0xff]  ;;  %s88_s17 = smov [#allocation2]  }
   0x3   :  { %v57_v4 = vld [vmem:[%s131_s1 + $0x1] ss:$0 sm:$0xff]  ;;  %s45_s18 = sshll.u32 %s88_s17, 4  ;;  %s46_s18 = int_to_ptr.vmem [resolvable:$true] %s45_s18 }
   0x4   :  { %s63_s0 = scalar_lea.vmem %s46_s18, 256  ;;  %p68_p1 = scmp.lt.s32.totalorder %s46_s18, %s46_s18 }
   0x5   :  { %p64_p0 = scmp.ne.s32.totalorder %s46_s18, %s63_s0  ;;  %p69_p2 = scmp.lt.s32.totalorder %s63_s0, %s63_s0 }
   0x6   :  { %23 = vperm.xlu0 %62, %v13_v2  }
   0x7   :  { %p70_p3 = por %p69_p2, %p68_p1 }
   0x9   :  { %p71_p4 = pnand %p70_p3, %p64_p0 }
  0x81   :  { %v19_v5 = vpop.permute.xlu0 %18 }
  0x82   :  { %v30_v6 = vmul.f32 %v56_v3, %v19_v5 }
  0x84   :  { %v36_v7 = vadd.f32 %v57_v4, %v30_v6 }
  0x85   :  { %v24_v8 = vpop.permute.xlu0 %23 }
  0x86   :  { %38 = vst [vmem:[#allocation2] sm:$0xff] %v36_v7  ;;  %v31_v9 = vmul.f32 %v56_v3, %v24_v8 }
  0x88   :  { %v37_v10 = vadd.f32 %v57_v4, %v31_v9 }
  0x8a   :  { %39 = vst [vmem:[#allocation2 + $0x8] sm:$0xff] %v37_v10 }
  0x8b   :  { %74 = shalt.err (!%p71_p4)
}
  0x8c   :  { %s75_s20 = scalar_lea.hbm %s132_s2, 256 }
  0x8d   :  { %p76_p5 = scmp.ne.s32.totalorder %s132_s2, %s75_s20  ;;  %p79_p6 = scmp.lt.u32.totalorder %s75_s20, %s132_s2 }
  0x8f   :  { %p81_p7 = pnand %p79_p6, %p76_p5 }
  0x91   :  { %84 = shalt.err (!%p81_p7)
}
  0x92   :  { %s89_s25 = smov 128   ;;  %s90_s26 = smov 8  }
  0x93   :  { %51 = dma.vmem_to_hbm [thread:$0]  %s46_s18, 256, %s132_s2, [#allocation3], %s89_s25, %s89_s25, %s90_s26  }
  0x94   :  { %85 = dma.done.wait [#allocation3], 256  }
  0x95   :  { %86 = vsyncadd [#allocation3], 4294967040 }
  0x96   :  { %55 = vsyncpa [#allocation3], 1 }

</bundles_post_ra>
